<compile_context>
chip_gen: v5e
topology: v5e:2x2
jax: 0.10.0
libtpu: 0.0.40
codegen_flags: <defaults>
</compile_context>

<pallas_src>
import numpy as np
import jax
import jax.numpy as jnp
from jax.experimental import pallas as pl
from jax.experimental.pallas import tpu as pltpu

_NEG = -1e9                      # fill for padded class columns (vanishes under LSE)
_LANE = 128
_MAX_TN = 4096                   # diminishing returns past multi-MiB tiles
_VMEM_DATA_BUDGET = 32 * 1024 * 1024   # per-core data budget, safe on v5e/v6e/v7x
_VMEM_LIMIT_CAP = 48 * 1024 * 1024     # stays well under v7x's 64 MiB physical VMEM


def _round_up(x, m):
    return (x + m - 1) // m * m


def make_ldam_kernel(s: float):
    s = float(s)

    def ldam_kernel(x_ref, tgt_ref, m_ref, loss_ref, max_ref, se_ref, tl_ref):
        i = pl.program_id(1)          # batch-tile index within this core split
        k = pl.program_id(2)          # class-block index
        nk = pl.num_programs(2)

        # Per-core-split partial-sum output is resident across (i, k); init once.
        @pl.when(jnp.logical_and(i == 0, k == 0))
        def _():
            loss_ref[...] = jnp.zeros_like(loss_ref)

        # Flash-softmax row state: re-init at the first class block of every tile.
        @pl.when(k == 0)
        def _():
            max_ref[...] = jnp.full(max_ref.shape, -jnp.inf, dtype=jnp.float32)
            se_ref[...] = jnp.zeros_like(se_ref)
            tl_ref[...] = jnp.zeros_like(tl_ref)

        x = x_ref[...].astype(jnp.float32)        # [TN, TC] logits (f32 compute)
        tgt = tgt_ref[...]                        # [TN, 1] int32 (-1 = padded row)
        m = m_ref[...].astype(jnp.float32)        # [1, TC] per-class margins
        TN, TC = x.shape

        col = jax.lax.broadcasted_iota(jnp.int32, (TN, TC), dimension=1) + k * TC
        onehot = col == tgt                       # [TN, TC] bool (global class ids)

        # Margin only applies at the target column, where m_list[target] == m_list[c],
        # so no batch_m cross-lane reduction is needed.
        z = s * (x - jnp.where(onehot, m, 0.0))   # scaled, margin-adjusted logits

        # Online (flash) log-sum-exp update across class blocks.
        m_prev = max_ref[...]
        m_new = jnp.maximum(m_prev, jnp.max(z, axis=1, keepdims=True))
        se_ref[...] = (se_ref[...] * jnp.exp(m_prev - m_new)
                       + jnp.sum(jnp.exp(z - m_new), axis=1, keepdims=True))
        tl_ref[...] = tl_ref[...] + jnp.sum(jnp.where(onehot, z, 0.0),
                                            axis=1, keepdims=True)
        max_ref[...] = m_new

        @pl.when(k == nk - 1)
        def _():
            valid = (tgt >= 0).astype(jnp.float32)   # mask batch-padding rows
            per_example = (max_ref[...] + jnp.log(se_ref[...]) - tl_ref[...]) * valid
            loss_ref[...] = loss_ref[...] + jnp.sum(per_example)

    return ldam_kernel


def ldam_loss(x, target, m_list, s=30.0, block_n=None, max_block_c=2048):
    """x: [N, C] logits (f32 or bf16), target: [N] int, m_list: [C] float."""
    N, C = x.shape
    itemsize = jnp.dtype(x.dtype).itemsize
    sub = 16 if itemsize <= 2 else 8          # sublane tile (bf16 needs 16)

    # ---- class-axis tiling: lane-dense blocks, balanced to minimize padding ----
    Cp0 = _round_up(max(C, _LANE), _LANE)
    max_block_c = max(_LANE, _round_up(int(max_block_c), _LANE))
    CT = pl.cdiv(Cp0, max_block_c)            # number of class blocks
    TC = _round_up(pl.cdiv(Cp0, CT), _LANE)   # class block width (multiple of 128)
    Cp = CT * TC

    # ---- batch tile from the VMEM budget (double-buffered x + lane-padded misc) ----
    per_row = 2 * TC * itemsize + 2 * _LANE * 4 + 3 * _LANE * 4
    fixed = 2 * 8 * TC * 4 + 2 * 8 * _LANE * 4
    tn_budget = max(sub, ((_VMEM_DATA_BUDGET - fixed) // per_row) // sub * sub)
    TN = min(tn_budget, _MAX_TN, _round_up(N, sub))
    if block_n is not None:
        TN = min(TN, max(sub, _round_up(int(block_n), sub)))

    # ---- core split (v7x megacore): per-split partial sums, summed in wrapper ----
    tiles = pl.cdiv(N, TN)
    P = 2 if tiles >= 2 else 1
    NT = pl.cdiv(tiles, P)                    # batch tiles per core split
    Np = P * NT * TN

    xp = x
    if Cp > C:
        xp = jnp.pad(xp, ((0, 0), (0, Cp - C)), constant_values=_NEG)
    if Np > N:
        xp = jnp.pad(xp, ((0, Np - N), (0, 0)))          # padded rows: zeros
    tgt = jnp.pad(target.astype(jnp.int32), (0, Np - N),
                  constant_values=-1).reshape(Np, 1)
    m2d = jnp.pad(m_list.astype(jnp.float32), (0, Cp - C)).reshape(1, Cp)

    est_vmem = 2 * TN * TC * itemsize + 5 * TN * _LANE * 4 + fixed
    vmem_limit = int(min(_VMEM_LIMIT_CAP,
                         max(32 * 1024 * 1024, est_vmem + (8 << 20))))

    cost = pl.CostEstimate(
        flops=6 * Np * Cp,
        transcendentals=Np * Cp,
        bytes_accessed=Np * Cp * itemsize + Np * 4 + Cp * 4 + P * _LANE * 4,
    )

    out = pl.pallas_call(
        make_ldam_kernel(float(s)),
        out_shape=jax.ShapeDtypeStruct((1, P * _LANE), jnp.float32),
        grid=(P, NT, CT),
        in_specs=[
            pl.BlockSpec((TN, TC), lambda p, i, k: (p * NT + i, k)),
            pl.BlockSpec((TN, 1), lambda p, i, k: (p * NT + i, 0)),
            pl.BlockSpec((1, TC), lambda p, i, k: (0, k)),
        ],
        out_specs=pl.BlockSpec((1, _LANE), lambda p, i, k: (0, p)),
        scratch_shapes=[pltpu.VMEM((TN, 1), jnp.float32),   # running max
                        pltpu.VMEM((TN, 1), jnp.float32),   # running sum-exp
                        pltpu.VMEM((TN, 1), jnp.float32)],  # target logit
        compiler_params=pltpu.CompilerParams(
            dimension_semantics=("parallel", "arbitrary", "arbitrary"),
            vmem_limit_bytes=vmem_limit,
        ),
        cost_estimate=cost,
    )(xp, tgt, m2d)

    # Sum per-core-split partials (lane 0 of each 128-lane block); mean over true N.
    partials = out.reshape(P, _LANE)[:, 0]
    return jnp.sum(partials) * (1.0 / N)


def ldam_loss_ref(x, target, m_list, s=30.0):
    """Pure-JAX reference for validation."""
    N, C = x.shape
    x = x.astype(jnp.float32)
    onehot = jax.nn.one_hot(target, C, dtype=jnp.float32)
    batch_m = (onehot * m_list[None, :]).sum(axis=1, keepdims=True)
    output = jnp.where(onehot.astype(bool), x - batch_m, x)
    z = s * output
    logp = jax.nn.log_softmax(z, axis=1)
    return -jnp.mean(jnp.sum(onehot * logp, axis=1))


if __name__ == "__main__":
    # Deterministic parameter setup (mirrors __init__)
    num_classes = 16
    max_m = 0.5
    s = 30.0
    cls_num_list = np.array([500, 400, 300, 250, 200, 150, 120, 100,
                             80, 60, 50, 40, 30, 20, 10, 5], dtype=np.float64)
    m_np = 1.0 / np.sqrt(np.sqrt(cls_num_list))
    m_np = m_np * (max_m / np.max(m_np))
    m_list = jnp.asarray(m_np, dtype=jnp.float32)

    key = jax.random.PRNGKey(0)
    k1, k2, k3, k4 = jax.random.split(key, 4)

    # Test 1: tiny single tile, single class block, no core split (f32)
    x = jax.random.normal(k1, (8, num_classes), dtype=jnp.float32)
    tgt = jax.random.randint(k2, (8,), 0, num_classes, dtype=jnp.int32)
    loss = ldam_loss(x, tgt, m_list, s=s)
    jax.block_until_ready(loss)
    ref = ldam_loss_ref(x, tgt, m_list, s=s)
    assert jnp.allclose(loss, ref, atol=1e-4, rtol=1e-4), (loss, ref)

    # Test 2: multi-tile grid, core split P=2, partial last tile (masking + accumulator)
    x2 = jax.random.normal(k3, (200, num_classes), dtype=jnp.float32)
    tgt2 = jax.random.randint(k4, (200,), 0, num_classes, dtype=jnp.int32)
    loss2 = ldam_loss(x2, tgt2, m_list, s=s, block_n=64)
    jax.block_until_ready(loss2)
    ref2 = ldam_loss_ref(x2, tgt2, m_list, s=s)
    assert jnp.allclose(loss2, ref2, atol=1e-4, rtol=1e-4), (loss2, ref2)

    # Test 3: bf16 logits DMA'd as-is, upcast in-kernel (16-sublane alignment path)
    loss3 = ldam_loss(x2.astype(jnp.bfloat16), tgt2, m_list, s=s, block_n=64)
    jax.block_until_ready(loss3)
    ref3 = ldam_loss_ref(x2.astype(jnp.bfloat16).astype(jnp.float32), tgt2, m_list, s=s)
    assert jnp.allclose(loss3, ref3, atol=1e-2, rtol=1e-2), (loss3, ref3)

    # Test 4: class-axis tiling (online LSE over 3 class blocks) + core split
    C4 = 300
    cls4 = np.linspace(500.0, 5.0, C4)
    m4 = 1.0 / np.sqrt(np.sqrt(cls4))
    m4 = m4 * (max_m / np.max(m4))
    m_list4 = jnp.asarray(m4, dtype=jnp.float32)
    k5, k6 = jax.random.split(k1)
    x4 = jax.random.normal(k5, (150, C4), dtype=jnp.float32)
    tgt4 = jax.random.randint(k6, (150,), 0, C4, dtype=jnp.int32)
    loss4 = ldam_loss(x4, tgt4, m_list4, s=s, block_n=64, max_block_c=128)
    jax.block_until_ready(loss4)
    ref4 = ldam_loss_ref(x4, tgt4, m_list4, s=s)
    assert jnp.allclose(loss4, ref4, atol=1e-3, rtol=1e-4), (loss4, ref4)

    print("KERNEL_OK")
</pallas_src>

<mosaic_0001>
module attributes {stable_mosaic.version = 11 : i64} {
  func.func @ldam_kernel(%arg0: i32, %arg1: i32, %arg2: i32, %arg3: memref<8x128xf32, #tpu.memory_space<vmem>>, %arg4: memref<8x1xi32, #tpu.memory_space<vmem>>, %arg5: memref<1x128xf32, #tpu.memory_space<vmem>>, %arg6: memref<1x128xf32, #tpu.memory_space<vmem>>, %arg7: memref<8x1xf32, #tpu.memory_space<vmem>>, %arg8: memref<8x1xf32, #tpu.memory_space<vmem>>, %arg9: memref<8x1xf32, #tpu.memory_space<vmem>>) attributes {dimension_semantics = [#tpu.dimension_semantics<parallel>, #tpu.dimension_semantics<arbitrary>, #tpu.dimension_semantics<arbitrary>], iteration_bounds = array<i64: 1, 1, 1>, scalar_prefetch = 0 : i64, scratch_operands = 3 : i64, tpu.core_type = #tpu.core_type<tc>, window_params = [{transform_indices = @transform_0, window_bounds = array<i64: 8, 128>}, {transform_indices = @transform_1, window_bounds = array<i64: 8, 1>}, {transform_indices = @transform_2, window_bounds = array<i64: 1, 128>}, {transform_indices = @transform_3, window_bounds = array<i64: 1, 128>}]} {
    %c0_i32 = arith.constant 0 : i32
    %0 = arith.cmpi eq, %arg1, %c0_i32 : i32
    %c0_i32_0 = arith.constant 0 : i32
    %1 = arith.cmpi eq, %arg2, %c0_i32_0 : i32
    %2 = arith.andi %0, %1 : i1
    %3 = arith.extui %2 : i1 to i32
    %c0_i32_1 = arith.constant 0 : i32
    %4 = arith.cmpi ne, %3, %c0_i32_1 : i32
    scf.if %4 {
      %cst_28 = arith.constant 0.000000e+00 : f32
      %50 = vector.broadcast %cst_28 : f32 to vector<1x128xf32>
      %c0_29 = arith.constant 0 : index
      %c0_30 = arith.constant 0 : index
      %51 = vector.load %arg6[%c0_29, %c0_30] : memref<1x128xf32, #tpu.memory_space<vmem>>, vector<1x128xf32>
      tpu.vector_store %arg6[%c0_29, %c0_30], %50 {strides = array<i32>} : memref<1x128xf32, #tpu.memory_space<vmem>>, vector<1x128xf32>,
    } else {
    }
    %c0_i32_2 = arith.constant 0 : i32
    %5 = arith.cmpi eq, %arg2, %c0_i32_2 : i32
    %6 = arith.extui %5 : i1 to i32
    %c0_i32_3 = arith.constant 0 : i32
    %7 = arith.cmpi ne, %6, %c0_i32_3 : i32
    scf.if %7 {
      %cst_28 = arith.constant 0xFF800000 : f32
      %50 = vector.broadcast %cst_28 : f32 to vector<8x1xf32>
      %c0_29 = arith.constant 0 : index
      %c0_30 = arith.constant 0 : index
      %51 = vector.load %arg7[%c0_29, %c0_30] : memref<8x1xf32, #tpu.memory_space<vmem>>, vector<8x1xf32>
      tpu.vector_store %arg7[%c0_29, %c0_30], %50 {strides = array<i32>} : memref<8x1xf32, #tpu.memory_space<vmem>>, vector<8x1xf32>,
      %cst_31 = arith.constant 0.000000e+00 : f32
      %52 = vector.broadcast %cst_31 : f32 to vector<8x1xf32>
      %c0_32 = arith.constant 0 : index
      %c0_33 = arith.constant 0 : index
      %53 = vector.load %arg8[%c0_32, %c0_33] : memref<8x1xf32, #tpu.memory_space<vmem>>, vector<8x1xf32>
      tpu.vector_store %arg8[%c0_32, %c0_33], %52 {strides = array<i32>} : memref<8x1xf32, #tpu.memory_space<vmem>>, vector<8x1xf32>,
      %cst_34 = arith.constant 0.000000e+00 : f32
      %54 = vector.broadcast %cst_34 : f32 to vector<8x1xf32>
      %c0_35 = arith.constant 0 : index
      %c0_36 = arith.constant 0 : index
      %55 = vector.load %arg9[%c0_35, %c0_36] : memref<8x1xf32, #tpu.memory_space<vmem>>, vector<8x1xf32>
      tpu.vector_store %arg9[%c0_35, %c0_36], %54 {strides = array<i32>} : memref<8x1xf32, #tpu.memory_space<vmem>>, vector<8x1xf32>,
    } else {
    }
    %c0 = arith.constant 0 : index
    %c0_4 = arith.constant 0 : index
    %8 = vector.load %arg3[%c0, %c0_4] : memref<8x128xf32, #tpu.memory_space<vmem>>, vector<8x128xf32>
    %c0_5 = arith.constant 0 : index
    %c0_6 = arith.constant 0 : index
    %9 = vector.load %arg4[%c0_5, %c0_6] : memref<8x1xi32, #tpu.memory_space<vmem>>, vector<8x1xi32>
    %c0_7 = arith.constant 0 : index
    %c0_8 = arith.constant 0 : index
    %10 = vector.load %arg5[%c0_7, %c0_8] : memref<1x128xf32, #tpu.memory_space<vmem>>, vector<1x128xf32>
    %11 = tpu.iota {dimensions = array<i32: 1>} : vector<8x128xi32>
    %c128_i32 = arith.constant 128 : i32
    %12 = arith.muli %arg2, %c128_i32 : i32
    %13 = vector.broadcast %12 : i32 to vector<8x128xi32>
    %14 = arith.addi %11, %13 : vector<8x128xi32>
    %15 = vector.broadcast %9 : vector<8x1xi32> to vector<8x128xi32>
    %16 = arith.cmpi eq, %14, %15 : vector<8x128xi32>
    %cst = arith.constant 0.000000e+00 : f32
    %17 = vector.shape_cast %10 : vector<1x128xf32> to vector<1x128xf32>
    %18 = vector.broadcast %17 : vector<1x128xf32> to vector<8x128xf32>
    %19 = vector.broadcast %cst : f32 to vector<8x128xf32>
    %20 = arith.select %16, %18, %19 : vector<8x128xi1>, vector<8x128xf32>
    %21 = arith.subf %8, %20 : vector<8x128xf32>
    %cst_9 = arith.constant 3.000000e+01 : f32
    %22 = vector.broadcast %cst_9 : f32 to vector<8x128xf32>
    %23 = arith.mulf %22, %21 : vector<8x128xf32>
    %c0_10 = arith.constant 0 : index
    %c0_11 = arith.constant 0 : index
    %24 = vector.load %arg7[%c0_10, %c0_11] : memref<8x1xf32, #tpu.memory_space<vmem>>, vector<8x1xf32>
    %cst_12 = arith.constant dense<0xFF800000> : vector<8xf32>
    %25 = vector.multi_reduction <maximumf>, %23, %cst_12 [1] : vector<8x128xf32> to vector<8xf32>
    %26 = vector.shape_cast %25 : vector<8xf32> to vector<8x1xf32>
    %27 = arith.maximumf %24, %26 : vector<8x1xf32>
    %c0_13 = arith.constant 0 : index
    %c0_14 = arith.constant 0 : index
    %28 = vector.load %arg8[%c0_13, %c0_14] : memref<8x1xf32, #tpu.memory_space<vmem>>, vector<8x1xf32>
    %29 = arith.subf %24, %27 : vector<8x1xf32>
    %30 = math.exp %29 : vector<8x1xf32>
    %31 = arith.mulf %28, %30 : vector<8x1xf32>
    %32 = vector.broadcast %27 : vector<8x1xf32> to vector<8x128xf32>
    %33 = arith.subf %23, %32 : vector<8x128xf32>
    %34 = math.exp %33 : vector<8x128xf32>
    %cst_15 = arith.constant dense<0.000000e+00> : vector<8xf32>
    %35 = vector.multi_reduction <add>, %34, %cst_15 [1] : vector<8x128xf32> to vector<8xf32>
    %36 = vector.shape_cast %35 : vector<8xf32> to vector<8x1xf32>
    %37 = arith.addf %31, %36 : vector<8x1xf32>
    %c0_16 = arith.constant 0 : index
    %c0_17 = arith.constant 0 : index
    %38 = vector.load %arg8[%c0_16, %c0_17] : memref<8x1xf32, #tpu.memory_space<vmem>>, vector<8x1xf32>
    tpu.vector_store %arg8[%c0_16, %c0_17], %37 {strides = array<i32>} : memref<8x1xf32, #tpu.memory_space<vmem>>, vector<8x1xf32>,
    %c0_18 = arith.constant 0 : index
    %c0_19 = arith.constant 0 : index
    %39 = vector.load %arg9[%c0_18, %c0_19] : memref<8x1xf32, #tpu.memory_space<vmem>>, vector<8x1xf32>
    %cst_20 = arith.constant 0.000000e+00 : f32
    %40 = vector.broadcast %cst_20 : f32 to vector<8x128xf32>
    %41 = arith.select %16, %23, %40 : vector<8x128xi1>, vector<8x128xf32>
    %cst_21 = arith.constant dense<0.000000e+00> : vector<8xf32>
    %42 = vector.multi_reduction <add>, %41, %cst_21 [1] : vector<8x128xf32> to vector<8xf32>
    %43 = vector.shape_cast %42 : vector<8xf32> to vector<8x1xf32>
    %44 = arith.addf %39, %43 : vector<8x1xf32>
    %c0_22 = arith.constant 0 : index
    %c0_23 = arith.constant 0 : index
    %45 = vector.load %arg9[%c0_22, %c0_23] : memref<8x1xf32, #tpu.memory_space<vmem>>, vector<8x1xf32>
    tpu.vector_store %arg9[%c0_22, %c0_23], %44 {strides = array<i32>} : memref<8x1xf32, #tpu.memory_space<vmem>>, vector<8x1xf32>,
    %c0_24 = arith.constant 0 : index
    %c0_25 = arith.constant 0 : index
    %46 = vector.load %arg7[%c0_24, %c0_25] : memref<8x1xf32, #tpu.memory_space<vmem>>, vector<8x1xf32>
    tpu.vector_store %arg7[%c0_24, %c0_25], %27 {strides = array<i32>} : memref<8x1xf32, #tpu.memory_space<vmem>>, vector<8x1xf32>,
    %c0_i32_26 = arith.constant 0 : i32
    %47 = arith.cmpi eq, %arg2, %c0_i32_26 : i32
    %48 = arith.extui %47 : i1 to i32
    %c0_i32_27 = arith.constant 0 : i32
    %49 = arith.cmpi ne, %48, %c0_i32_27 : i32
    scf.if %49 {
      %c0_i32_28 = arith.constant 0 : i32
      %50 = vector.broadcast %c0_i32_28 : i32 to vector<8x1xi32>
      %51 = arith.cmpi sge, %9, %50 : vector<8x1xi32>
      %52 = arith.extui %51 : vector<8x1xi1> to vector<8x1xi32>
      %53 = arith.sitofp %52 : vector<8x1xi32> to vector<8x1xf32>
      %c0_29 = arith.constant 0 : index
      %c0_30 = arith.constant 0 : index
      %54 = vector.load %arg7[%c0_29, %c0_30] : memref<8x1xf32, #tpu.memory_space<vmem>>, vector<8x1xf32>
      %c0_31 = arith.constant 0 : index
      %c0_32 = arith.constant 0 : index
      %55 = vector.load %arg8[%c0_31, %c0_32] : memref<8x1xf32, #tpu.memory_space<vmem>>, vector<8x1xf32>
      %56 = math.log %55 : vector<8x1xf32>
      %57 = arith.addf %54, %56 : vector<8x1xf32>
      %c0_33 = arith.constant 0 : index
      %c0_34 = arith.constant 0 : index
      %58 = vector.load %arg9[%c0_33, %c0_34] : memref<8x1xf32, #tpu.memory_space<vmem>>, vector<8x1xf32>
      %59 = arith.subf %57, %58 : vector<8x1xf32>
      %60 = arith.mulf %59, %53 : vector<8x1xf32>
      %c0_35 = arith.constant 0 : index
      %c0_36 = arith.constant 0 : index
      %61 = vector.load %arg6[%c0_35, %c0_36] : memref<1x128xf32, #tpu.memory_space<vmem>>, vector<1x128xf32>
      %62 = vector.shape_cast %60 : vector<8x1xf32> to vector<1x8x1xf32>
      %cst_37 = arith.constant dense<0.000000e+00> : vector<1xf32>
      %63 = vector.multi_reduction <add>, %62, %cst_37 [1, 2] : vector<1x8x1xf32> to vector<1xf32>
      %64 = vector.shape_cast %63 : vector<1xf32> to vector<1x1x1xf32>
      %65 = vector.extract %64[0, 0, 0] : f32 from vector<1x1x1xf32>
      %66 = vector.broadcast %65 : f32 to vector<1x128xf32>
      %67 = arith.addf %61, %66 : vector<1x128xf32>
      %c0_38 = arith.constant 0 : index
      %c0_39 = arith.constant 0 : index
      %68 = vector.load %arg6[%c0_38, %c0_39] : memref<1x128xf32, #tpu.memory_space<vmem>>, vector<1x128xf32>
      tpu.vector_store %arg6[%c0_38, %c0_39], %67 {strides = array<i32>} : memref<1x128xf32, #tpu.memory_space<vmem>>, vector<1x128xf32>,
    } else {
    }
    return
  }
  func.func @transform_0(%arg0: i32, %arg1: i32, %arg2: i32) -> (i32, i32) {
    %c1_i32 = arith.constant 1 : i32
    %0 = arith.muli %arg0, %c1_i32 : i32
    %1 = arith.addi %0, %arg1 : i32
    %c0_i32 = arith.constant 0 : i32
    return %1, %arg2 : i32, i32
  }
  func.func @transform_1(%arg0: i32, %arg1: i32, %arg2: i32) -> (i32, i32) {
    %c1_i32 = arith.constant 1 : i32
    %0 = arith.muli %arg0, %c1_i32 : i32
    %1 = arith.addi %0, %arg1 : i32
    %c0_i32 = arith.constant 0 : i32
    %c0_i32_0 = arith.constant 0 : i32
    return %1, %c0_i32 : i32, i32
  }
  func.func @transform_2(%arg0: i32, %arg1: i32, %arg2: i32) -> (i32, i32) {
    %c0_i32 = arith.constant 0 : i32
    %c0_i32_0 = arith.constant 0 : i32
    return %c0_i32, %arg2 : i32, i32
  }
  func.func @transform_3(%arg0: i32, %arg1: i32, %arg2: i32) -> (i32, i32) {
    %c0_i32 = arith.constant 0 : i32
    %c0_i32_0 = arith.constant 0 : i32
    return %c0_i32, %arg0 : i32, i32
  }
}

</mosaic_0001>

<bundles_post_ra>
// kernel: tpu_custom_call.1
= control target key start
LH: loop header
LB: loop body
LE: loop exit
PB: predicated region body
PF: predicated region fallthrough
CT: control target
= control target key end

     0   :  { %vm59_vm0 = vcmask 7168   ;;  %v208_v1 = vmov 0   ;;  %v209_v2 = vmov 0.0   ;;  %s251_s0 = inlined_call_operand.vmem [shape: f32[8,128], index: 0, kind: input, shape index: {}]   ;;  %s252_s1 = inlined_call_operand.vmem [shape: s32[8,1], index: 1, kind: input, shape index: {}]   ;;  %s253_s2 = inlined_call_operand.vmem [shape: f32[1,128], index: 2, kind: input, shape index: {}]   ;;  %s254_s3 = inlined_call_operand.hbm [shape: f32[1,128], index: 3, kind: output, shape index: {}]  }
   0x1   :  { %v64_v0 = vld [vmem:[%s252_s1] sm:$0xff]  ;;  %173 = vset.pattern.permute.xlu0 %v208_v1  ;;  %61 = vst.msk [vmem:[#allocation3] sm:$0xff] %vm59_vm0, %v209_v2  ;;  %174 = vset.pattern.permute.xlu1 %v208_v1 }
   0x2   :  { %vm113_vm1 = vcmp.ge.s32.totalorder %v64_v0, 0 }
   0x3   :  { %8 = vsyncpa [#allocation6], 0  ;;  %72 = vperm.xlu0 %173, %v64_v0   ;;  %v166_v3 = vsel %vm113_vm1, 1.0, %v209_v2  ;;  %55 = vst [vmem:[#allocation5] sm:$0x1] %v209_v2  ;;  %v66_v4 = vlaneseq  ;;  %v63_v8 = vld [vmem:[%s251_s0] sm:$0xff] }
   0x4   :  { %62 = vst.msk [vmem:[#allocation4] sm:$0xff] %vm59_vm0, %v209_v2  ;;  %v175_v6 = vld [vmem:[%s253_s2] ss:$0 sm:$0xff]  ;;  %v210_v13 = vmov -inf   ;;  %s211_s0 = smov [#allocation5]   ;;  %s145_s19 = sshll.u32 %s254_s3, 4  ;;  %s146_s19 = int_to_ptr.hbm [resolvable:$true] %s145_s19 }
   0x5   :  { %v67_v5 = vand.u32 127, %v66_v4  ;;  %60 = vst.msk [vmem:[#allocation2] sm:$0xff] %vm59_vm0, %v210_v13  ;;  %s143_s2 = sshll.u32 %s211_s0, 4  ;;  %s144_s2 = int_to_ptr.vmem [resolvable:$true] %s143_s2 }
   0x8   :  { %v85_v27 = vld [vmem:[#allocation3] sm:$0xff] }
   0xa   :  { %v124_v47 = vld [vmem:[#allocation5] sm:$0x1] }
   0xb   :  { %v103_v15 = vld [vmem:[#allocation4] sm:$0xff] }
   0xc   :  { %v81_v14 = vld [vmem:[#allocation2] sm:$0xff] }
  0x75   :  { %v73_v7 = vpop.permute.xlu0 %72 }
  0x76   :  { %vm74_vm2 = vcmp.eq.s32.totalorder %v67_v5, %v73_v7 }
  0x77   :  { %v78_v9 = vsel %vm74_vm2, %v175_v6, 0.0 }
  0x78   :  { %v79_v10 = vsub.f32 %v63_v8, %v78_v9 }
  0x7a   :  { %v80_v11 = vmul.f32 30.0, %v79_v10 }
  0x7c   :  { %82 = vmax.xlane.f32.xlu0 %v80_v11  ;;  %v104_v12 = vsel %vm74_vm2, %v80_v11, 0.0 }
  0x7d   :  { %105 = vadd.xlane.f32.xlu2 %v104_v12 }
  0xef   :  { %v83_v16 = vpop.xlane.xlu0 %82 }
  0xf0   :  { %v84_v17 = vmax.f32 %v81_v14, %v83_v16  ;;  %v106_v18 = vpop.xlane.xlu2 %105 }
  0xf1   :  { %v107_v19 = vadd.f32 %v106_v18, %v103_v15 }
  0xf2   :  { %v86_v20 = vsub.f32 %v81_v14, %v84_v17  ;;  %109 = vst.msk [vmem:[#allocation2] sm:$0xff] %vm59_vm0, %v84_v17  ;;  %92 = vperm.xlu1 %174, %v84_v17  }
  0xf3   :  { %108 = vst.msk [vmem:[#allocation4] sm:$0xff] %vm59_vm0, %v107_v19 }
  0xf4   :  { %v87_v25 = vmul.f32 1.442695, %v86_v20 }
  0xf9   :  { %v116_v34 = vld [vmem:[#allocation2] sm:$0xff] }
  0xfa   :  { %v121_v36 = vld [vmem:[#allocation4] sm:$0xff] }
 0x164   :  { %v93_v21 = vpop.permute.xlu1 %92 }
 0x165   :  { %v95_v22 = vsub.f32 %v80_v11, %v93_v21 }
 0x167   :  { %v96_v23 = vmul.f32 1.442695, %v95_v22 }
 0x169   :  { %176 = vpow2.f32 %v96_v23 }
 0x16a   :  { %178 = vpow2.f32 %v87_v25 }
 0x16f   :  { %v177_v24 = vpop.eup %176 }
 0x170   :  { %98 = vadd.xlane.f32.xlu1 %v177_v24  ;;  %v179_v26 = vpop.eup %178 }
 0x171   :  { %v89_v28 = vmul.f32 %v179_v26, %v85_v27 }
 0x1e3   :  { %v99_v29 = vpop.xlane.xlu1 %98 }
 0x1e4   :  { %v100_v30 = vadd.f32 %v99_v29, %v89_v28 }
 0x1e6   :  { %102 = vst.msk [vmem:[#allocation3] sm:$0xff] %vm59_vm0, %v100_v30 }
 0x1ed   :  { %v117_v31 = vld [vmem:[#allocation3] sm:$0xff] }
 0x1ee   :  { %180 = vlog2.f32 %v117_v31 }
 0x1f4   :  { %v181_v32 = vpop.eup %180 }
 0x1f5   :  { %v119_v33 = vmul.f32 0.6931472, %v181_v32 }
 0x1f7   :  { %v120_v35 = vadd.f32 %v119_v33, %v116_v34 }
 0x1f9   :  { %v122_v37 = vsub.f32 %v120_v35, %v121_v36 }
 0x1fb   :  { %v123_v38 = vmul.f32 %v166_v3, %v122_v37 }
 0x1fd   :  { %v125_v39 = vsel %vm59_vm0, %v123_v38, 0.0 }
 0x1fe   :  { %126 = vadd.xlane.f32.xlu2 %v125_v39 }
 0x271   :  { %v127_v40 = vpop.xlane.xlu2 %126 }
 0x272   :  { %v128_v41 = vrot.slane %v127_v40, 4 }
 0x274   :  { %v129_v42 = vadd.f32 %v128_v41, %v127_v40 }
 0x276   :  { %v130_v43 = vrot.slane %v129_v42, 2 }
 0x278   :  { %v131_v44 = vadd.f32 %v130_v43, %v129_v42 }
 0x27a   :  { %v132_v45 = vrot.slane %v131_v44, 1 }
 0x27c   :  { %v133_v46 = vadd.f32 %v132_v45, %v131_v44 }
 0x27e   :  { %167 = vpush %v133_v46 }
 0x2af   :  { %s168_s20 = spop %167 }
 0x2b0   :  { %v135_v48 = vstv %s168_s20 }
 0x2b1   :  { %v136_v49 = vadd.f32 %v135_v48, %v124_v47 }
 0x2b3   :  { %137 = vst [vmem:[#allocation5] sm:$0x1] %v136_v49 }
 0x2b4   :  { %148 = dma.vmem_to_hbm [thread:$0]  %s144_s2, 16, %s146_s19, [#allocation6]  }
 0x2b5   :  { %206 = dma.done.wait [#allocation6], 16  }
 0x2b6   :  { %207 = vsyncadd [#allocation6], 4294967280 }
 0x2b7   :  { %153 = vsyncpa [#allocation6], 1 }

</bundles_post_ra>
